<compile_context>
chip_gen: v7x
topology: tpu7x:2x2x1
jax: 0.10.0
libtpu: 0.0.40
codegen_flags: <defaults>
</compile_context>

<pallas_src>
import numpy as np
import jax
import jax.numpy as jnp
from jax.experimental import pallas as pl
from jax.experimental.pallas import tpu as pltpu

N_PTS = 10                    # points per sample (U has 30 = 10*3 values per row)
N_V = 45                      # number of ordered pair differences (9+8+...+1)
N_Q = 210                     # rows of INDEX4
INDEX4 = np.zeros((210, 3))   # exactly as in the PyTorch module (all indices are 0)

# Packed output-slab layout: one 128-lane block per row.
LANES = 128
DIST_OFF = 0        # lanes 0:45   -> Dist
ANGC_OFF = 48       # lanes 48:56  -> cos(Angles); arccos applied in the wrapper


def _cdiv(a, b):
    return -(-a // b)


def _round_up(a, m):
    return _cdiv(a, m) * m


def _build_fused_weight():
    """(30, 384) +/-1 selector: U(n,30) @ W -> [Vx | Vy | Vz], 45 live cols each, padded to 128."""
    src1, src2 = [], []
    for lag in range(1, N_PTS):
        for j in range(N_PTS - lag):
            src1.append(j + lag)
            src2.append(j)
    W = np.zeros((3 * N_PTS, 3 * 128), np.float32)
    for p in range(N_V):
        for d in range(3):
            W[src1[p] * 3 + d, d * 128 + p] += 1.0   # + P[:, src1[p], d]
            W[src2[p] * 3 + d, d * 128 + p] -= 1.0   # - P[:, src2[p], d]
    return W


def _feature_kernel(u_ref, w_ref, o_ref):
    # One fused selection matmul: coordinate de-interleave + all 45 pair differences.
    v = jnp.dot(u_ref[...], w_ref[...],
                precision=jax.lax.Precision.HIGHEST,
                preferred_element_type=jnp.float32)              # (tile, 384)
    vx, vy, vz = v[:, 0:128], v[:, 128:256], v[:, 256:384]       # cols >= 45 are exactly 0

    # Dist = ||V||  (lanes 45:128 stay exactly zero -> dead padding in the slab).
    dist = jnp.sqrt(vx * vx + vy * vy + vz * vz)                 # (tile, 128)

    # cos(angle) between consecutive lag-1 differences (V12 = first 9 columns of V).
    num = (vx[:, 0:8] * vx[:, 1:9]
           + vy[:, 0:8] * vy[:, 1:9]
           + vz[:, 0:8] * vz[:, 1:9])
    ang_cos = num / (dist[:, 0:8] * dist[:, 1:9])                # single divide (perf review)

    o_ref[...] = dist                                            # one unmasked 128-lane store
    o_ref[:, ANGC_OFF:ANGC_OFF + 8] = ang_cos                    # tiny 8-lane masked store


def feature_new(U, tile=2048):
    """Returns (Dist (n,45), COS (n,210), SIN (n,210), Angles (n,8)) like Feature_new.forward."""
    # TODO(synk): the dihedral COS/SIN path is specialized to the module's all-zero INDEX4
    # (cross of identical vectors -> 0, then 0/0 -> NaN, exactly like torch); a non-trivial
    # INDEX4 would require an in-kernel gather of V columns instead of the constant below.
    assert not INDEX4.any(), "kernel is specialized to the module's all-zero INDEX4"

    U = jnp.asarray(U, jnp.float32)
    n = U.shape[0]

    # Batch tile: multiple of 8 sublanes; aim for ~>=8 grid steps so the "parallel" grid
    # axis can shard across both v7x TensorCores, never exceeding the requested tile.
    target = max(8, _round_up(_cdiv(n, 8), 8))
    tile = int(max(8, min(_round_up(int(tile), 8), target)))

    W = jnp.asarray(_build_fused_weight())

    slab = pl.pallas_call(
        _feature_kernel,
        out_shape=jax.ShapeDtypeStruct((n, LANES), jnp.float32),
        grid=(_cdiv(n, tile),),
        in_specs=[
            pl.BlockSpec((tile, 3 * N_PTS), lambda i: (i, 0)),
            # constant weight block; Pallas skips re-DMA of an unchanged block
            pl.BlockSpec((3 * N_PTS, 3 * 128), lambda i: (0, 0)),
        ],
        out_specs=pl.BlockSpec((tile, LANES), lambda i: (i, 0)),
        compiler_params=pltpu.CompilerParams(
            dimension_semantics=("parallel",),          # shards row tiles across TCs on v7x
            vmem_limit_bytes=48 * 1024 * 1024),
    )(U, W)

    dist = slab[:, DIST_OFF:DIST_OFF + N_V]
    # arccos on the (n, 8) cosine slice — exact match to the reference acos, negligible cost.
    ang = jnp.arccos(slab[:, ANGC_OFF:ANGC_OFF + 8])
    # INDEX4 all zeros -> C1 = C2 = N = cross(V0, V0) = 0 -> every COS/SIN entry is 0/0 = NaN,
    # exactly as in the PyTorch module.  Emit the constant here instead of broadcasting NaN
    # from the kernel (this was ~80% of the previous kernel's HBM write traffic).
    cos = jnp.full((n, N_Q), jnp.nan, jnp.float32)
    sin = jnp.full((n, N_Q), jnp.nan, jnp.float32)
    return dist, cos, sin, ang


def feature_new_ref_np(U):
    """NumPy (float64) reference mirroring the PyTorch forward (no fp-contraction surprises)."""
    U = np.asarray(U, np.float64)
    n = U.shape[0]
    P = U.reshape(n, N_PTS, 3)
    chunks = [P[:, lag:, :] - P[:, : N_PTS - lag, :] for lag in range(1, N_PTS)]
    V = np.concatenate(chunks, axis=1)                    # (n, 45, 3)
    idx = INDEX4.astype(np.int64)
    VA, VB, VC = V[:, idx[:, 0], :], V[:, idx[:, 1], :], V[:, idx[:, 2], :]
    with np.errstate(divide="ignore", invalid="ignore"):
        C1 = np.cross(VA, VB)
        C2 = np.cross(VB, VC)
        Nv = np.cross(C2, VB)
        dC1 = np.linalg.norm(C1, axis=2)
        dC2 = np.linalg.norm(C2, axis=2)
        COS = np.sum(C1 * C2, axis=2) / dC1 / dC2
        SIN = np.sum(Nv * C1, axis=2) / dC1 / np.linalg.norm(Nv, axis=2)
        V12 = chunks[0]
        Ang = np.arccos(np.sum(V12[:, 0:8] * V12[:, 1:9], axis=2)
                        / np.linalg.norm(V12[:, 0:8], axis=2)
                        / np.linalg.norm(V12[:, 1:9], axis=2))
        Dist = np.linalg.norm(V, axis=2)
    return Dist, COS, SIN, Ang


if __name__ == "__main__":
    key = jax.random.PRNGKey(0)
    U = jax.random.normal(key, (2, 30), dtype=jnp.float32)   # n=2 samples of 10 3-D points

    out = jax.block_until_ready(feature_new(U))
    dist, cos, sin, ang = [np.asarray(o) for o in out]

    rd, rc, rs, ra = feature_new_ref_np(np.asarray(U))

    assert dist.shape == (2, 45) and cos.shape == (2, 210)
    assert sin.shape == (2, 210) and ang.shape == (2, 8)
    assert np.allclose(dist, rd, rtol=1e-4, atol=1e-5)
    assert np.allclose(ang, ra, rtol=1e-4, atol=1e-4)
    # COS/SIN are all-NaN by construction (INDEX4 all zeros -> zero cross products -> 0/0),
    # exactly like the PyTorch module; compare with equal_nan.
    assert np.allclose(cos, rc, rtol=1e-3, atol=1e-4, equal_nan=True)
    assert np.allclose(sin, rs, rtol=1e-3, atol=1e-4, equal_nan=True)

    print("KERNEL_OK")
</pallas_src>

<mosaic_0001>
module attributes {stable_mosaic.version = 11 : i64} {
  func.func @_feature_kernel(%arg0: i32, %arg1: memref<8x30xf32, #tpu.memory_space<vmem>>, %arg2: memref<30x384xf32, #tpu.memory_space<vmem>>, %arg3: memref<8x128xf32, #tpu.memory_space<vmem>>) attributes {dimension_semantics = [#tpu.dimension_semantics<parallel>], iteration_bounds = array<i64: 1>, scalar_prefetch = 0 : i64, scratch_operands = 0 : i64, tpu.core_type = #tpu.core_type<tc>, window_params = [{transform_indices = @transform_0, window_bounds = array<i64: 8, 30>}, {pipeline_mode = #tpu.pipeline_mode<synchronous>, transform_indices = @transform_1, window_bounds = array<i64: 30, 384>}, {transform_indices = @transform_2, window_bounds = array<i64: 8, 128>}]} {
    %c0 = arith.constant 0 : index
    %c0_0 = arith.constant 0 : index
    %0 = vector.load %arg1[%c0, %c0_0] : memref<8x30xf32, #tpu.memory_space<vmem>>, vector<8x30xf32>
    %c0_1 = arith.constant 0 : index
    %c0_2 = arith.constant 0 : index
    %1 = vector.load %arg2[%c0_1, %c0_2] : memref<30x384xf32, #tpu.memory_space<vmem>>, vector<30x384xf32>
    %cst = arith.constant dense<0.000000e+00> : vector<8x384xf32>
    %2 = tpu.matmul %0, %1, %cst {dimension_numbers = #tpu.dot_dimension_numbers<[1], [0], [0], [1], [0, 0, 1, 1], [], []>, precision = #tpu.contract_precision<fp32>} : vector<8x30xf32>, vector<30x384xf32>, vector<8x384xf32> -> vector<8x384xf32>
    %3 = vector.extract_strided_slice %2 {offsets = [0, 0], sizes = [8, 128], strides = [1, 1]} : vector<8x384xf32> to vector<8x128xf32>
    %4 = vector.extract_strided_slice %2 {offsets = [0, 128], sizes = [8, 128], strides = [1, 1]} : vector<8x384xf32> to vector<8x128xf32>
    %5 = vector.extract_strided_slice %2 {offsets = [0, 256], sizes = [8, 128], strides = [1, 1]} : vector<8x384xf32> to vector<8x128xf32>
    %6 = arith.mulf %3, %3 : vector<8x128xf32>
    %7 = arith.mulf %4, %4 : vector<8x128xf32>
    %8 = arith.addf %6, %7 : vector<8x128xf32>
    %9 = arith.mulf %5, %5 : vector<8x128xf32>
    %10 = arith.addf %8, %9 : vector<8x128xf32>
    %11 = math.sqrt %10 : vector<8x128xf32>
    %12 = vector.extract_strided_slice %3 {offsets = [0, 0], sizes = [8, 8], strides = [1, 1]} : vector<8x128xf32> to vector<8x8xf32>
    %13 = vector.extract_strided_slice %3 {offsets = [0, 1], sizes = [8, 8], strides = [1, 1]} : vector<8x128xf32> to vector<8x8xf32>
    %14 = arith.mulf %12, %13 : vector<8x8xf32>
    %15 = vector.extract_strided_slice %4 {offsets = [0, 0], sizes = [8, 8], strides = [1, 1]} : vector<8x128xf32> to vector<8x8xf32>
    %16 = vector.extract_strided_slice %4 {offsets = [0, 1], sizes = [8, 8], strides = [1, 1]} : vector<8x128xf32> to vector<8x8xf32>
    %17 = arith.mulf %15, %16 : vector<8x8xf32>
    %18 = arith.addf %14, %17 : vector<8x8xf32>
    %19 = vector.extract_strided_slice %5 {offsets = [0, 0], sizes = [8, 8], strides = [1, 1]} : vector<8x128xf32> to vector<8x8xf32>
    %20 = vector.extract_strided_slice %5 {offsets = [0, 1], sizes = [8, 8], strides = [1, 1]} : vector<8x128xf32> to vector<8x8xf32>
    %21 = arith.mulf %19, %20 : vector<8x8xf32>
    %22 = arith.addf %18, %21 : vector<8x8xf32>
    %23 = vector.extract_strided_slice %11 {offsets = [0, 0], sizes = [8, 8], strides = [1, 1]} : vector<8x128xf32> to vector<8x8xf32>
    %24 = vector.extract_strided_slice %11 {offsets = [0, 1], sizes = [8, 8], strides = [1, 1]} : vector<8x128xf32> to vector<8x8xf32>
    %25 = arith.mulf %23, %24 : vector<8x8xf32>
    %26 = arith.divf %22, %25 : vector<8x8xf32>
    %c0_3 = arith.constant 0 : index
    %c0_4 = arith.constant 0 : index
    %27 = vector.load %arg3[%c0_3, %c0_4] : memref<8x128xf32, #tpu.memory_space<vmem>>, vector<8x128xf32>
    tpu.vector_store %arg3[%c0_3, %c0_4], %11 {strides = array<i32>} : memref<8x128xf32, #tpu.memory_space<vmem>>, vector<8x128xf32>,
    %c0_5 = arith.constant 0 : index
    %c48 = arith.constant 48 : index
    %28 = vector.load %arg3[%c0_5, %c48] : memref<8x128xf32, #tpu.memory_space<vmem>>, vector<8x8xf32>
    tpu.vector_store %arg3[%c0_5, %c48], %26 {strides = array<i32>} : memref<8x128xf32, #tpu.memory_space<vmem>>, vector<8x8xf32>,
    return
  }
  func.func @transform_0(%arg0: i32) -> (i32, i32) {
    %c0_i32 = arith.constant 0 : i32
    %c0_i32_0 = arith.constant 0 : i32
    return %arg0, %c0_i32 : i32, i32
  }
  func.func @transform_1(%arg0: i32) -> (i32, i32) {
    %c0_i32 = arith.constant 0 : i32
    %c0_i32_0 = arith.constant 0 : i32
    %c0_i32_1 = arith.constant 0 : i32
    return %c0_i32, %c0_i32_0 : i32, i32
  }
  func.func @transform_2(%arg0: i32) -> (i32, i32) {
    %c0_i32 = arith.constant 0 : i32
    %c0_i32_0 = arith.constant 0 : i32
    return %arg0, %c0_i32 : i32, i32
  }
}

</mosaic_0001>

<bundles_post_ra>
// kernel: tpu_custom_call.1
= control target key start
LH: loop header
LB: loop body
LE: loop exit
PB: predicated region body
PF: predicated region fallthrough
CT: control target
= control target key end

     0   :  { %7 = vsyncpa [#allocation3], 0  ;;  %s1705_s0 = inlined_call_operand.hbm [shape: f32[2,30], index: 0, kind: input, shape index: {}]   ;;  %s1706_s1 = inlined_call_operand.hbm [shape: f32[30,384], index: 1, kind: input, shape index: {}]   ;;  %s1707_s2 = inlined_call_operand.hbm [shape: f32[2,128], index: 2, kind: output, shape index: {}]  }
   0x1   :  { %8 = vsyncpa [#allocation6], 0 }
   0x2   :  { %9 = vsyncpa [#allocation4], 0 }
   0x3   :  { %14 = vsyncadd [#allocation3], 96  ;;  %s1444_s9 = smov [#allocation2]   ;;  %s1372_s13 = scalar_lea.hbm %s1705_s0, 32 }
   0x4   :  { %s15_s10 = sshll.u32 %s1444_s9, 4  ;;  %p1373_p0 = scmp.ne.s32.totalorder %s1705_s0, %s1372_s13  ;;  %s16_s10 = int_to_ptr.vmem [resolvable:$true] %s15_s10 }
   0x5   :  { %p1376_p1 = scmp.lt.u32.totalorder %s1372_s13, %s1705_s0 }
   0x7   :  { %p1378_p2 = pnand %p1376_p1, %p1373_p0 }
   0x9   :  { %1381 = shalt.err (!%p1378_p2)
}
   0xa   :  { %s1382_s18 = scalar_lea.vmem %s16_s10, 32  ;;  %s1386_s19 = scalar_lea.vmem %s16_s10, 128 }
   0xb   :  { %p1383_p3 = scmp.ne.s32.totalorder %s16_s10, %s1382_s18  ;;  %p1387_p4 = scmp.lt.s32.totalorder %s16_s10, %s16_s10 }
   0xc   :  { %p1388_p5 = scmp.lt.s32.totalorder %s1386_s19, %s1382_s18 }
   0xe   :  { %p1389_p6 = por %p1388_p5, %p1387_p4 }
  0x10   :  { %p1390_p7 = pnand %p1389_p6, %p1383_p3 }
  0x12   :  { %1393 = shalt.err (!%p1390_p7)
}
  0x13   :  { %s1445_s20 = smov 32   ;;  %s1446_s21 = smov 2  }
  0x14   :  { %21 = dma.hbm_to_vmem [thread:$0]  %s1705_s0, 32, %s16_s10, [#allocation3], %s1445_s20, %s1445_s20, %s1446_s21  }
  0x15   :  { %s1447_s24 = smov [#allocation5]   ;;  %s1394_s28 = scalar_lea.hbm %s1706_s1, 1536 }
  0x16   :  { %s27_s25 = sshll.u32 %s1447_s24, 4  ;;  %p1395_p8 = scmp.ne.s32.totalorder %s1706_s1, %s1394_s28  ;;  %s28_s25 = int_to_ptr.vmem [resolvable:$true] %s27_s25 }
  0x17   :  { %p1398_p9 = scmp.lt.u32.totalorder %s1394_s28, %s1706_s1 }
  0x19   :  { %p1400_p10 = pnand %p1398_p9, %p1395_p8 }
  0x1b   :  { %1403 = shalt.err (!%p1400_p10)
}
  0x1c   :  { %s1404_s5 = scalar_lea.vmem %s28_s25, 1536  ;;  %p1409_p12 = scmp.lt.s32.totalorder %s28_s25, %s28_s25 }
  0x1d   :  { %p1405_p11 = scmp.ne.s32.totalorder %s28_s25, %s1404_s5  ;;  %p1410_p13 = scmp.lt.s32.totalorder %s1404_s5, %s1404_s5 }
  0x1f   :  { %p1411_p0 = por %p1410_p13, %p1409_p12 }
  0x21   :  { %p1412_p1 = pnand %p1411_p0, %p1405_p11 }
  0x23   :  { %1415 = shalt.err (!%p1412_p1)
}
  0x24   :  { %s1448_s0 = smov 384   ;;  %s1449_s6 = smov 24  }
  0x25   :  { %33 = dma.hbm_to_vmem [thread:$0]  %s1706_s1, 1536, %s28_s25, [#allocation6], %s1448_s0, %s1448_s0, %s1449_s6  }
  0x26   :  { %1438 = dma.done.wait [#allocation3], 128  }
  0x27   :  { %1439 = vsyncadd [#allocation3], 4294967168 }
  0x28   :  { %1440 = dma.done.wait [#allocation6], 1536  }
  0x29   :  { %1441 = vsyncadd [#allocation6], 4294965760  ;;  %v1450_v0 = vmov 0.0|0.0   ;;  %vm1451_vm0 = vmmov 0   ;;  %v1452_v1 = vmov 0.0   ;;  %v42_v2 = vld [vmem:[#allocation5 + $0x8] sm:$0xff] }
  0x2a   :  { %1300 = vmatprep.subr.bf16.mxu1 %v1450_v0  ;;  %1194 = vmatprep.mubr.msk.f32.mxu1 %vm1451_vm0, %v1452_v1  ;;  %v45_v3 = vld [vmem:[#allocation5 + $0x20] sm:$0xff]  ;;  %v43_v4 = vld [vmem:[#allocation5 + $0x10] sm:$0xff]  ;;  %vm57_vm1 = vcmask 1045504   ;;  %vm53_vm2 = vcmask 244736   ;;  %v67_v5 = vand.u32 4294901760, %v42_v2  ;;  %v46_v7 = vld [vmem:[#allocation5 + $0x28] sm:$0xff] }
  0x2b   :  { %139 = vmatprep.mubr.f32.mxu0 %v1452_v1  ;;  %v71_v6 = vand.u32 4294901760, %v45_v3  ;;  %v611_v8 = vand.u32 4294901760, %v43_v4  ;;  %v41_v9 = vld [vmem:[#allocation5] sm:$0xff]  ;;  %v44_v10 = vld [vmem:[#allocation5 + $0x18] sm:$0xff]  ;;  %v614_v11 = vand.u32 4294901760, %v46_v7  ;;  %v47_v26 = vld [vmem:[#allocation5 + $0x30] sm:$0xff] }
  0x2c   :  { %v69_v12 = vand.u32 4294901760, %v41_v9  ;;  %v73_v13 = vand.u32 4294901760, %v44_v10  ;;  %v48_v14 = vld [vmem:[#allocation5 + $0x38] sm:$0xff]  ;;  %v51_v15 = vld [vmem:[#allocation5 + $0x50] sm:$0x3f]  ;;  %v1504_v17 = vsub.f32 %v42_v2, %v67_v5  ;;  %v49_v20 = vld [vmem:[#allocation5 + $0x40] sm:$0xff] }
  0x2d   :  { %v1502_v16 = vpack.c.bf16 %v71_v6, %v67_v5  ;;  %v1506_v18 = vsub.f32 %v45_v3, %v71_v6  ;;  %v1508_v19 = vsub.f32 %v43_v4, %v611_v8  ;;  %v52_v21 = vld [vmem:[#allocation5 + $0x58] sm:$0x3f]  ;;  %v1510_v22 = vpack.c.bf16 %v614_v11, %v611_v8  ;;  %v50_v27 = vld [vmem:[#allocation5 + $0x48] sm:$0x3f]  ;;  %s1453_s1 = smov 127   ;;  %s1454_s9 = smov 48  }
  0x2e   :  { %v1512_v23 = vsub.f32 %v46_v7, %v614_v11  ;;  %v1514_v24 = vpack.c.bf16 %v73_v13, %v69_v12  ;;  %v1516_v25 = vsub.f32 %v41_v9, %v69_v12  ;;  %v40_v28 = vld [vmem:[#allocation2] sm:$0xff]  ;;  %v1519_v29 = vsub.f32 %v44_v10, %v73_v13 }
  0x2f   :  { %1253 = vmatprep.subr.bf16.mxu0 %v1502_v16  ;;  %v62_v30 = vsel %vm57_vm1, %v51_v15, 0  ;;  %v75_v31 = vand.u32 4294901760, %v48_v14  ;;  %v65_v32 = vsel %vm57_vm1, %v52_v21, 0  ;;  %1302 = vmatpush3.bf16.msra.mxu1 %v1510_v22  ;;  %v617_v34 = vand.u32 4294901760, %v49_v20 }
  0x30   :  { %1255 = vmatpush1.bf16.msra.mxu0 %v1514_v24  ;;  %v79_v33 = vand.u32 4294901760, %v62_v30  ;;  %v620_v35 = vand.u32 4294901760, %v65_v32  ;;  %v59_v36 = vsel %vm57_vm1, %v50_v27, 0  ;;  %1303 = vmatprep.subr.bf16.mxu1 %v1450_v0  ;;  %v77_v38 = vand.u32 4294901760, %v47_v26 }
  0x31   :  { %v1527_v37 = vsub.f32 %v48_v14, %v75_v31  ;;  %v81_v39 = vand.u32 4294901760, %v59_v36  ;;  %v55_v40 = vsel %vm53_vm2, %v40_v28, 0  ;;  %v1536_v44 = vsub.f32 %v49_v20, %v617_v34 }
  0x32   :  { %v1530_v41 = vpack.c.bf16 %v79_v33, %v75_v31  ;;  %v1532_v42 = vsub.f32 %v62_v30, %v79_v33  ;;  %v1534_v43 = vpack.c.bf16 %v620_v35, %v617_v34  ;;  %v1538_v45 = vsub.f32 %v65_v32, %v620_v35 }
  0x33   :  { %v1540_v46 = vpack.c.bf16 %v81_v39, %v77_v38  ;;  %v1542_v47 = vsub.f32 %v47_v26, %v77_v38  ;;  %v1544_v48 = vsub.f32 %v59_v36, %v81_v39  ;;  %v1548_v49 = vand.u32 4294901760, %v55_v40 }
  0x34   :  { %1257 = vmatprep.subr.bf16.mxu0 %v1530_v41  ;;  %1305 = vmatpush3.bf16.msra.mxu1 %v1534_v43  ;;  %v153_v50 = vand.u32 4294901760, %v1504_v17  ;;  %v165_v51 = vand.u32 4294901760, %v1506_v18  ;;  %v692_v52 = vand.u32 4294901760, %v1508_v19  ;;  %v699_v53 = vand.u32 4294901760, %v1512_v23 }
  0x35   :  { %1259 = vmatpush1.bf16.msra.mxu0 %v1540_v46  ;;  %1306 = vmatprep.subr.bf16.mxu1 %v1450_v0  ;;  %v159_v54 = vand.u32 4294901760, %v1516_v25  ;;  %v171_v55 = vand.u32 4294901760, %v1519_v29  ;;  %v177_v56 = vand.u32 4294901760, %v1527_v37  ;;  %v1560_v57 = vsub.f32 %v55_v40, %v1548_v49 }
  0x36   :  { %v154_v58 = vsub.f32 %v1504_v17, %v153_v50  ;;  %v166_v59 = vsub.f32 %v1506_v18, %v165_v51  ;;  %v693_v60 = vsub.f32 %v1508_v19, %v692_v52  ;;  %v700_v61 = vsub.f32 %v1512_v23, %v699_v53 }
  0x37   :  { %v160_v62 = vsub.f32 %v1516_v25, %v159_v54  ;;  %v172_v63 = vsub.f32 %v1519_v29, %v171_v55  ;;  %v178_v2 = vsub.f32 %v1527_v37, %v177_v56  ;;  %v1584_v3 = vand.u32 4294901760, %v1560_v57 }
  0x38   :  { %v155_v4 = vand.u32 4294901760, %v154_v58  ;;  %v167_v5 = vand.u32 4294901760, %v166_v59  ;;  %v694_v6 = vand.u32 4294901760, %v693_v60  ;;  %v701_v7 = vand.u32 4294901760, %v700_v61 }
  0x39   :  { %v161_v8 = vand.u32 4294901760, %v160_v62  ;;  %v173_v9 = vand.u32 4294901760, %v172_v63  ;;  %v179_v10 = vand.u32 4294901760, %v178_v2  ;;  %v143_v11 = vsub.f32 %v1560_v57, %v1584_v3 }
  0x3a   :  { %v1260_v12 = vpack.c.bf16 %v167_v5, %v155_v4  ;;  %v189_v13 = vand.u32 4294901760, %v1532_v42  ;;  %v706_v14 = vand.u32 4294901760, %v1536_v44  ;;  %v1307_v15 = vpack.c.bf16 %v701_v7, %v694_v6 }
  0x3b   :  { %v1262_v20 = vpack.c.bf16 %v173_v9, %v161_v8  ;;  %v713_v21 = vand.u32 4294901760, %v1538_v45  ;;  %v183_v26 = vand.u32 4294901760, %v1542_v47  ;;  %v144_v27 = vand.u32 4294901760, %v143_v11 }
  0x3c   :  { %1261 = vmatprep.subr.bf16.mxu0 %v1260_v12  ;;  %v190_v28 = vsub.f32 %v1532_v42, %v189_v13  ;;  %v707_v30 = vsub.f32 %v1536_v44, %v706_v14  ;;  %v195_v31 = vand.u32 4294901760, %v1544_v48  ;;  %v1268_v60 = vpack.c.bf16 %v1506_v18, %v1504_v17 }
  0x3d   :  { %v714_v32 = vsub.f32 %v1538_v45, %v713_v21  ;;  %v184_v33 = vsub.f32 %v1542_v47, %v183_v26  ;;  %1195 = vmatmul.mubr.f32.vlgmr.msra.gmra.mrb[0].mxu1 %v144_v27  ;;  %145 = vmatmul.mubr.f32.vlgmr.msra.gmra.mrb[0].mxu0 %v144_v27  ;;  %v1313_v62 = vpack.c.bf16 %v1512_v23, %v1508_v19  ;;  %vm1136_vm5 = vcmask 458112  }
  0x3e   :  { %v191_v34 = vand.u32 4294901760, %v190_v28  ;;  %v708_v35 = vand.u32 4294901760, %v707_v30  ;;  %v196_v36 = vsub.f32 %v1544_v48, %v195_v31  ;;  %1308 = vmatpush3.bf16.msra.mxu1 %v1307_v15  ;;  %1263 = vmatpush1.bf16.msra.mxu0 %v1262_v20  ;;  %v1270_v63 = vpack.c.bf16 %v1519_v29, %v1516_v25 }
  0x3f   :  { %v715_v38 = vand.u32 4294901760, %v714_v32  ;;  %v185_v39 = vand.u32 4294901760, %v184_v33  ;;  %1309 = vmatprep.subr.bf16.mxu1 %v1450_v0  ;;  %1205 = vmatprep.mubr.msk.f32.mxu1 %vm1451_vm0, %v1452_v1  ;;  %v1272_v2 = vpack.c.bf16 %v1532_v42, %v1527_v37  ;;  %v1316_v4 = vpack.c.bf16 %v1538_v45, %v1536_v44 }
  0x40   :  { %v1264_v40 = vpack.c.bf16 %v191_v34, %v179_v10  ;;  %v197_v58 = vand.u32 4294901760, %v196_v36  ;;  %255 = vmatprep.mubr.f32.mxu0 %v1452_v1  ;;  %v1274_v5 = vpack.c.bf16 %v1544_v48, %v1542_v47  ;;  %v1284_v6 = vpack.c.bf16 %v165_v51, %v153_v50 }
  0x41   :  { %v1310_v59 = vpack.c.bf16 %v715_v38, %v708_v35  ;;  %v1286_v17 = vpack.c.bf16 %v171_v55, %v159_v54  ;;  %v1288_v18 = vpack.c.bf16 %v189_v13, %v177_v56  ;;  %v1328_v19 = vpack.c.bf16 %v713_v21, %v706_v14 }
  0x42   :  { %1265 = vmatprep.subr.bf16.mxu0 %v1264_v40  ;;  %v1266_v61 = vpack.c.bf16 %v197_v58, %v185_v39  ;;  %v1290_v23 = vpack.c.bf16 %v195_v31, %v183_v26 }
  0x43   :  { %1311 = vmatpush3.bf16.msra.mxu1 %v1310_v59 }
  0x44   :  { %1267 = vmatpush1.bf16.msra.mxu0 %v1266_v61  ;;  %1312 = vmatprep.subr.bf16.mxu1 %v1450_v0 }
  0x45   :  { %1269 = vmatprep.subr.bf16.mxu0 %v1268_v60 }
  0x46   :  { %1206 = vmatmul.mubr.f32.vlgmr.msra.gmra.mrb[0].mxu1 %v1548_v49 }
  0x47   :  { %257 = vmatmul.mubr.f32.vlgmr.msra.gmra.mrb[0].mxu0 %v1548_v49  ;;  %1314 = vmatpush3.bf16.msra.mxu1 %v1313_v62 }
  0x48   :  { %1271 = vmatpush1.bf16.msra.mxu0 %v1270_v63  ;;  %1315 = vmatprep.subr.bf16.mxu1 %v1450_v0 }
  0x49   :  { %1273 = vmatprep.subr.bf16.mxu0 %v1272_v2  ;;  %1216 = vmatprep.mubr.msk.f32.mxu1 %vm1451_vm0, %v1452_v1 }
  0x4a   :  { %343 = vmatprep.mubr.f32.mxu0 %v1452_v1 }
  0x4b   :  { %1317 = vmatpush3.bf16.msra.mxu1 %v1316_v4 }
  0x4c   :  { %1275 = vmatpush1.bf16.msra.mxu0 %v1274_v5  ;;  %1318 = vmatprep.subr.bf16.mxu1 %v1450_v0 }
  0x4d   :  { %1277 = vmatprep.subr.bf16.mxu0 %v1502_v16 }
  0x4e   :  { %1217 = vmatmul.mubr.f32.vlgmr.msra.gmra.mrb[0].mxu1 %v1560_v57 }
  0x4f   :  { %346 = vmatmul.mubr.f32.vlgmr.msra.gmra.mrb[0].mxu0 %v1560_v57  ;;  %1320 = vmatpush3.bf16.msra.mxu1 %v1510_v22  ;;  %v1325_v57 = vpack.c.bf16 %v699_v53, %v692_v52 }
  0x50   :  { %1279 = vmatpush1.bf16.msra.mxu0 %v1514_v24  ;;  %1321 = vmatprep.subr.bf16.mxu1 %v1450_v0 }
  0x51   :  { %1281 = vmatprep.subr.bf16.mxu0 %v1530_v41  ;;  %1227 = vmatprep.mubr.msk.f32.mxu1 %vm1451_vm0, %v1452_v1 }
  0x52   :  { %424 = vmatprep.mubr.f32.mxu0 %v1452_v1 }
  0x53   :  { %1323 = vmatpush3.bf16.msra.mxu1 %v1534_v43 }
  0x54   :  { %1283 = vmatpush1.bf16.msra.mxu0 %v1540_v46  ;;  %1324 = vmatprep.subr.bf16.mxu1 %v1450_v0 }
  0x55   :  { %1285 = vmatprep.subr.bf16.mxu0 %v1284_v6 }
  0x56   :  { %1228 = vmatmul.mubr.f32.vlgmr.msra.gmra.mrb[0].mxu1 %v1584_v3 }
  0x57   :  { %428 = vmatmul.mubr.f32.vlgmr.msra.gmra.mrb[0].mxu0 %v1584_v3  ;;  %1326 = vmatpush3.bf16.msra.mxu1 %v1325_v57 }
  0x58   :  { %1287 = vmatpush1.bf16.msra.mxu0 %v1286_v17  ;;  %1327 = vmatprep.subr.bf16.mxu1 %v1450_v0 }
  0x59   :  { %1289 = vmatprep.subr.bf16.mxu0 %v1288_v18  ;;  %1238 = vmatprep.mubr.msk.f32.mxu1 %vm1451_vm0, %v1452_v1 }
  0x5a   :  { %522 = vmatprep.mubr.f32.mxu0 %v1452_v1 }
  0x5b   :  { %1329 = vmatpush3.bf16.msra.mxu1 %v1328_v19 }
  0x5c   :  { %1291 = vmatpush1.bf16.msra.mxu0 %v1290_v23  ;;  %1330 = vmatprep.subr.bf16.mxu1 %v1450_v0 }
  0x5d   :  { %1293 = vmatprep.subr.bf16.mxu0 %v1502_v16 }
  0x5e   :  { %1239 = vmatmul.mubr.f32.vlgmr.msra.gmra.mrb[0].mxu1 %v1548_v49 }
  0x5f   :  { %524 = vmatmul.mubr.f32.vlgmr.msra.gmra.mrb[0].mxu0 %v1548_v49  ;;  %1332 = vmatpush3.bf16.msra.mxu1 %v1510_v22 }
  0x60   :  { %1295 = vmatpush1.bf16.msra.mxu0 %v1514_v24  ;;  %1333 = vmatprep.subr.bf16.mxu1 %v1450_v0 }
  0x61   :  { %1297 = vmatprep.subr.bf16.mxu0 %v1530_v41  ;;  %1249 = vmatprep.mubr.msk.f32.mxu1 %vm1451_vm0, %v1452_v1 }
  0x62   :  { %602 = vmatprep.mubr.f32.mxu0 %v1452_v1 }
  0x63   :  { %1335 = vmatpush3.bf16.msra.mxu1 %v1534_v43 }
  0x64   :  { %1299 = vmatpush1.bf16.msra.mxu0 %v1540_v46 }
  0x66   :  { %1250 = vmatmul.mubr.f32.vlgmr.msra.gmra.mrb[0].mxu1 %v1548_v49 }
  0x67   :  { %604 = vmatmul.mubr.f32.vlgmr.msra.gmra.mrb[0].mxu0 %v1548_v49 }
 0x139   :  { %v1091_v16 = vpop.f32.mrb[0].mxu1 }
 0x13a   :  { %v605_v22 = vpop.f32.mrb[0].mxu0  ;;  %v1251_v24 = vpop.f32.mrb[1].mxu1  ;;  %v1098_v37 = vmul.f32 %v1091_v16, %v1091_v16 }
 0x13b   :  { %v1095_v25 = vmul.f32 %v605_v22, %v605_v22  ;;  %v607_v0 = vpop.f32.mrb[1].mxu0 }
 0x13c   :  { %v1096_v29 = vmul.f32 %v607_v0, %v607_v0  ;;  %1113 = vrot.lane.b32.xlu1 %v607_v0, %s1453_s1 }
 0x13e   :  { %v1097_v41 = vadd.f32 %v1096_v29, %v1095_v25 }
 0x140   :  { %v1099_v42 = vadd.f32 %v1098_v37, %v1097_v41  ;;  %1119 = vrot.lane.b32.xlu1 %v1091_v16, %s1453_s1 }
 0x142   :  { %1368 = vrsqrt.f32 %v1099_v42  ;;  %vm1102_vm3 = vcmp.eq.f32.partialorder %v1099_v42, inf  ;;  %v1105_v44 = vand.u32 2147483648, %v1099_v42  ;;  %vm1104_vm4 = vcmp.eq.f32.partialorder %v1099_v42, 0.0 }
 0x14c   :  { %v1369_v1 = vpop.eup %1368 }
 0x14d   :  { %v1101_v43 = vmul.f32 %v1369_v1, %v1099_v42 }
 0x14f   :  { %v1103_v45 = vsel %vm1102_vm3, %v1099_v42, %v1101_v43 }
 0x150   :  { %v1106_v46 = vsel %vm1104_vm4, %v1105_v44, %v1103_v45 }
 0x151   :  { %1125 = vrot.lane.b32.xlu0 %v1106_v46, %s1453_s1  ;;  %1131 = vst [vmem:[#allocation7] sm:$0xff] %v1106_v46 }
 0x155   :  { %1108 = vrot.lane.b32.xlu0 %v605_v22, %s1453_s1 }
 0x1ae   :  { %v1114_v47 = vpop.permute.xlu1 %1113 }
 0x1af   :  { %v1116_v52 = vmul.f32 %v1114_v47, %v607_v0 }
 0x1b2   :  { %v1120_v50 = vpop.permute.xlu1 %1119 }
 0x1b3   :  { %v1122_v54 = vmul.f32 %v1120_v50, %v1091_v16 }
 0x1c3   :  { %v1126_v48 = vpop.permute.xlu0 %1125 }
 0x1c4   :  { %v1128_v49 = vmul.f32 %v1126_v48, %v1106_v46 }
 0x1c6   :  { %1370 = vrcp.f32 %v1128_v49 }
 0x1c7   :  { %v1109_v51 = vpop.permute.xlu0 %1108 }
 0x1c8   :  { %v1111_v53 = vmul.f32 %v1109_v51, %v605_v22 }
 0x1ca   :  { %v1117_v55 = vadd.f32 %v1116_v52, %v1111_v53 }
 0x1cc   :  { %v1123_v56 = vadd.f32 %v1122_v54, %v1117_v55 }
 0x1d0   :  { %v1371_v3 = vpop.eup %1370 }
 0x1d1   :  { %v1130_v7 = vmul.f32 %v1371_v3, %v1123_v56 }
 0x1d3   :  { %1133 = vrot.lane.b32.xlu0 %v1130_v7, %s1454_s9 }
 0x245   :  { %v1134_v8 = vpop.permute.xlu0 %1133 }
 0x246   :  { %1137 = vst.msk [vmem:[#allocation7] sm:$0xff] %vm1136_vm5, %v1134_v8 }
 0x247   :  { %1142 = vsyncadd [#allocation4], 96  ;;  %s1455_s10 = smov [#allocation7]  }
 0x248   :  { %s1143_s11 = sshll.u32 %s1455_s10, 4  ;;  %s1144_s11 = int_to_ptr.vmem [resolvable:$true] %s1143_s11 }
 0x249   :  { %s1416_s12 = scalar_lea.vmem %s1144_s11, 32  ;;  %s1420_s13 = scalar_lea.vmem %s1144_s11, 128 }
 0x24a   :  { %p1417_p2 = scmp.ne.s32.totalorder %s1144_s11, %s1416_s12  ;;  %p1421_p3 = scmp.lt.s32.totalorder %s1144_s11, %s1144_s11 }
 0x24b   :  { %p1422_p4 = scmp.lt.s32.totalorder %s1420_s13, %s1416_s12 }
 0x24d   :  { %p1423_p5 = por %p1422_p4, %p1421_p3 }
 0x24f   :  { %p1424_p6 = pnand %p1423_p5, %p1417_p2 }
 0x251   :  { %1427 = shalt.err (!%p1424_p6)
}
 0x252   :  { %s1428_s16 = scalar_lea.hbm %s1707_s2, 32 }
 0x253   :  { %p1429_p7 = scmp.ne.s32.totalorder %s1707_s2, %s1428_s16  ;;  %p1432_p8 = scmp.lt.u32.totalorder %s1428_s16, %s1707_s2 }
 0x255   :  { %p1434_p9 = pnand %p1432_p8, %p1429_p7 }
 0x257   :  { %1437 = shalt.err (!%p1434_p9)
}
 0x258   :  { %1149 = dma.vmem_to_hbm [thread:$0]  %s1144_s11, 32, %s1707_s2, [#allocation4], %s1445_s20, %s1445_s20, %s1446_s21  }
 0x259   :  { %1442 = dma.done.wait [#allocation4], 128  }
 0x25a   :  { %1443 = vsyncadd [#allocation4], 4294967168 }
 0x25b   :  { %1153 = vsyncpa [#allocation3], 1 }
 0x25c   :  { %1154 = vsyncpa [#allocation6], 1 }
 0x25d   :  { %1155 = vsyncpa [#allocation4], 1 }

</bundles_post_ra>
